<compile_context>
chip_gen: v5e
topology: v5e:2x2
jax: 0.10.0
libtpu: 0.0.40
codegen_flags: <defaults>
</compile_context>

<pallas_src>
import functools

import jax
import jax.numpy as jnp
from jax.experimental import pallas as pl
from jax.experimental.pallas import tpu as pltpu

IGNORE_INDEX = 255


def _vmem_capacity_bytes() -> int:
    """Physical VMEM of the current chip; conservative (v7x) fallback."""
    try:
        return int(pltpu.get_tpu_info().vmem_capacity_bytes)
    except Exception:  # not on TPU / API unavailable at trace time
        return 64 * 1024 * 1024


def _ce_weighted_kernel(logits_ref, tgt_ref, w_ref, out_ref, acc_ref, *,
                        hw: int, tile_p: int, tiles_per_split: int):
    """Accumulates sum over pixels of (CE_loss * weight) for one (image, split).

    logits_ref: (1, C, tile_p)   tgt_ref/w_ref: (1, 1, tile_p)
    out_ref:    (1, 1, 1, 1)     acc_ref: VMEM (1, tile_p) f32
    """
    s = pl.program_id(1)          # split index (megacore when N == 1)
    i = pl.program_id(2)          # pixel-tile index within the split

    @pl.when(i == 0)
    def _():
        acc_ref[...] = jnp.zeros_like(acc_ref)

    x = logits_ref[0].astype(jnp.float32)        # (C, TP)  classes on sublanes
    t = tgt_ref[0]                               # (1, TP)  int32
    w = w_ref[0].astype(jnp.float32)             # (1, TP)

    # Numerically stable log-sum-exp over the class (sublane) axis.
    m = jnp.max(x, axis=0, keepdims=True)                        # (1, TP)
    lse = jnp.log(jnp.sum(jnp.exp(x - m), axis=0, keepdims=True)) + m

    # Gather x[target[p], p] via iota compare (target==255 matches nothing -> 0).
    cls = jax.lax.broadcasted_iota(jnp.int32, x.shape, 0)         # (C, TP)
    x_t = jnp.sum(jnp.where(cls == t, x, 0.0), axis=0, keepdims=True)

    # Validity: not ignore_index AND inside the real pixel range.  This masks
    # the ragged last tile AND any fully out-of-range (index-clamped) tile of
    # the second split.
    tile_idx = s * tiles_per_split + i
    pix = jax.lax.broadcasted_iota(jnp.int32, (1, tile_p), 1) + tile_idx * tile_p
    valid = (t != IGNORE_INDEX) & (pix < hw)

    # where-select (not multiply-by-zero) so garbage lanes can't leak NaN/Inf.
    contrib = jnp.where(valid, (lse - x_t) * w, 0.0)              # (1, TP)
    # TODO(synk): if v5e bundle profiling ever shows the single vst slot binding,
    # fold the accumulator to (8, tp/8) and do a sublane+lane reduce at the end.
    acc_ref[...] += contrib                                       # VPU add only

    @pl.when(i == pl.num_programs(2) - 1)
    def _():
        # Single cross-lane reduce per (image, split).
        out_ref[...] = jnp.sum(acc_ref[...]).reshape(1, 1, 1, 1)


@functools.partial(jax.jit, static_argnames=("tile_p",))
def cross_entropy_2d_pixel_wise_weighted(output, target, pixel_wise_weight,
                                         tile_p=None):
    """output: (N, C, H, W) float logits (f32 or bf16 — bf16 preferred, it
    halves the dominant HBM traffic); target: (N, H, W) int;
    pixel_wise_weight: (N, H, W) float. Returns scalar float32."""
    N, C, H, W = output.shape
    HW = H * W

    # Free reshapes only — no transpose, no padding copies of the logits.
    logits = output.reshape(N, C, HW)                  # keep input dtype (bf16 ok)
    tgt = target.reshape(N, 1, HW).astype(jnp.int32)
    wgt = pixel_wise_weight.reshape(N, 1, HW)

    l_isz = jnp.dtype(logits.dtype).itemsize
    w_isz = jnp.dtype(wgt.dtype).itemsize

    # Scoped VMEM: well under physical capacity (v7x: 64 MiB -> 48 MiB;
    # v5e/v6e: 128 MiB -> 96 MiB) so large C still double-buffers cleanly.
    vmem_cap = _vmem_capacity_bytes()
    vmem_limit = min((vmem_cap * 3) // 4, 96 * 1024 * 1024)

    hw_ceil = ((HW + 127) // 128) * 128
    if tile_p is None:
        # Per-pixel VMEM footprint:
        #   double-buffered logits            : 2 * C * itemsize
        #   double-buffered target + weight   : 2 * (4 + itemsize_w)
        #   ~4 f32 (C, tp) elementwise temps  : 4 * C * 4
        #   (1, tp) accumulator / (1,tp) temps: ~8
        bytes_per_px = 2 * C * l_isz + 2 * (4 + w_isz) + 4 * C * 4 + 8
        tp = ((vmem_limit * 2) // 3) // bytes_per_px
    else:
        tp = int(tile_p)
    tp = max(128, min((tp // 128) * 128, 32768, hw_ceil))
    n_tiles = (HW + tp - 1) // tp

    # Megacore: when there is no batch parallelism (N == 1), split the pixel
    # tiles across a size-2 "parallel" axis so both v7x TensorCores are used.
    # It is a plain serial loop (no-op cost) on single-core v5e/v6e.
    n_splits = 2 if (N == 1 and n_tiles >= 2) else 1
    tiles_per_split = (n_tiles + n_splits - 1) // n_splits
    last_tile = n_tiles - 1

    def tile_index(s, i):
        # Clamp so the (at most one) padded tile of the last split re-reads a
        # valid tile; its lanes are fully masked in-kernel (pix >= HW).
        return jnp.minimum(s * tiles_per_split + i, last_tile)

    kernel = functools.partial(_ce_weighted_kernel, hw=HW, tile_p=tp,
                               tiles_per_split=tiles_per_split)

    cost = pl.CostEstimate(
        flops=int(6 * N * C * HW),
        transcendentals=int(N * HW * (C + 1)),                    # exp + log
        bytes_accessed=int(N * HW * (C * l_isz + 4 + w_isz) + N * n_splits * 4),
    )

    # TODO(synk): if profiling at this tile size still shows exposed DMA, add
    # pipeline_mode=pl.Buffered(3) to the logits BlockSpec only (costs C*tp*isz
    # extra VMEM; re-check the v7x budget).
    partial_sums = pl.pallas_call(
        kernel,
        out_shape=jax.ShapeDtypeStruct((N, n_splits, 1, 1), jnp.float32),
        grid_spec=pltpu.PrefetchScalarGridSpec(
            num_scalar_prefetch=0,
            grid=(N, n_splits, tiles_per_split),
            in_specs=[
                pl.BlockSpec((1, C, tp), lambda n, s, i: (n, 0, tile_index(s, i))),
                pl.BlockSpec((1, 1, tp), lambda n, s, i: (n, 0, tile_index(s, i))),
                pl.BlockSpec((1, 1, tp), lambda n, s, i: (n, 0, tile_index(s, i))),
            ],
            out_specs=pl.BlockSpec((1, 1, 1, 1), lambda n, s, i: (n, s, 0, 0)),
            scratch_shapes=[pltpu.VMEM((1, tp), jnp.float32)],
        ),
        compiler_params=pltpu.CompilerParams(
            dimension_semantics=("parallel", "parallel", "arbitrary"),
            vmem_limit_bytes=int(vmem_limit),
        ),
        cost_estimate=cost,
    )(logits, tgt, wgt)

    # torch.mean divides by the total number of pixels (ignored ones included).
    # Divide by N and HW separately so huge pixel counts (N*HW > 2^24) don't
    # lose bits in an f32 product.
    return jnp.sum(partial_sums) / jnp.float32(N) / jnp.float32(HW)


def _reference(output, target, pixel_wise_weight):
    """Pure-JAX reference reproducing torch CE (reduction='none', ignore_index=255)."""
    logits = jnp.transpose(output, (0, 2, 3, 1)).astype(jnp.float32)  # NHWC
    logz = jax.nn.logsumexp(logits, axis=-1)
    t = target.astype(jnp.int32)
    safe_t = jnp.where(t == IGNORE_INDEX, 0, t)
    x_t = jnp.take_along_axis(logits, safe_t[..., None], axis=-1)[..., 0]
    loss = jnp.where(t == IGNORE_INDEX, 0.0, logz - x_t)
    return jnp.mean(loss * pixel_wise_weight.astype(jnp.float32))


def _make_inputs(key, N, C, H, W):
    k1, k2, k3, k4 = jax.random.split(key, 4)
    output = jax.random.normal(k1, (N, C, H, W), dtype=jnp.float32)
    target = jax.random.randint(k2, (N, H, W), 0, C, dtype=jnp.int32)
    ignore_mask = jax.random.uniform(k3, (N, H, W)) < 0.1
    target = jnp.where(ignore_mask, IGNORE_INDEX, target)
    weight = jax.random.uniform(k4, (N, H, W), dtype=jnp.float32)
    return output, target, weight


if __name__ == "__main__":
    key = jax.random.PRNGKey(0)
    kA, kB = jax.random.split(key)

    # Case 1: small batched case (auto tile size, no megacore split needed).
    out_, tgt_, w_ = _make_inputs(kA, N=2, C=4, H=16, W=16)
    got = jax.block_until_ready(
        cross_entropy_2d_pixel_wise_weighted(out_, tgt_, w_))
    ref = _reference(out_, tgt_, w_)
    assert jnp.allclose(got, ref, rtol=1e-5, atol=1e-5), (got, ref)

    # Case 2: N == 1 with a forced small tile so the size-2 megacore split and
    # the odd-tile-count clamping path are exercised (HW=384, tp=128 -> 3 tiles).
    out1, tgt1, w1 = _make_inputs(kB, N=1, C=5, H=16, W=24)
    got1 = jax.block_until_ready(
        cross_entropy_2d_pixel_wise_weighted(out1, tgt1, w1, tile_p=128))
    ref1 = _reference(out1, tgt1, w1)
    assert jnp.allclose(got1, ref1, rtol=1e-5, atol=1e-5), (got1, ref1)

    print("KERNEL_OK")
</pallas_src>

<mosaic_0001>
module attributes {stable_mosaic.version = 11 : i64} {
  func.func @_ce_weighted_kernel(%arg0: i32, %arg1: i32, %arg2: i32, %arg3: memref<1x4x256xf32, #tpu.memory_space<vmem>>, %arg4: memref<1x1x256xi32, #tpu.memory_space<vmem>>, %arg5: memref<1x1x256xf32, #tpu.memory_space<vmem>>, %arg6: memref<1x1x1x1xf32, #tpu.memory_space<vmem>>, %arg7: memref<1x256xf32, #tpu.memory_space<vmem>>) attributes {dimension_semantics = [#tpu.dimension_semantics<parallel>, #tpu.dimension_semantics<parallel>, #tpu.dimension_semantics<arbitrary>], iteration_bounds = array<i64: 2, 1, 1>, scalar_prefetch = 0 : i64, scratch_operands = 1 : i64, tpu.core_type = #tpu.core_type<tc>, window_params = [{transform_indices = @transform_0, window_bounds = array<i64: 1, 4, 256>}, {transform_indices = @transform_1, window_bounds = array<i64: 1, 1, 256>}, {transform_indices = @transform_2, window_bounds = array<i64: 1, 1, 256>}, {transform_indices = @transform_3, window_bounds = array<i64: 1, 1, 1, 1>}]} {
    %c0_i32 = arith.constant 0 : i32
    %0 = arith.cmpi eq, %arg2, %c0_i32 : i32
    %1 = arith.extui %0 : i1 to i32
    %c0_i32_0 = arith.constant 0 : i32
    %2 = arith.cmpi ne, %1, %c0_i32_0 : i32
    scf.if %2 {
      %cst_20 = arith.constant 0.000000e+00 : f32
      %46 = vector.broadcast %cst_20 : f32 to vector<1x256xf32>
      %c0_21 = arith.constant 0 : index
      %c0_22 = arith.constant 0 : index
      %47 = vector.load %arg7[%c0_21, %c0_22] : memref<1x256xf32, #tpu.memory_space<vmem>>, vector<1x256xf32>
      tpu.vector_store %arg7[%c0_21, %c0_22], %46 {strides = array<i32>} : memref<1x256xf32, #tpu.memory_space<vmem>>, vector<1x256xf32>,
    } else {
    }
    %c0 = arith.constant 0 : index
    %c0_1 = arith.constant 0 : index
    %c0_2 = arith.constant 0 : index
    %3 = vector.load %arg3[%c0, %c0_1, %c0_2] : memref<1x4x256xf32, #tpu.memory_space<vmem>>, vector<1x4x256xf32>
    %4 = vector.shape_cast %3 : vector<1x4x256xf32> to vector<4x256xf32>
    %c0_3 = arith.constant 0 : index
    %c0_4 = arith.constant 0 : index
    %c0_5 = arith.constant 0 : index
    %5 = vector.load %arg4[%c0_3, %c0_4, %c0_5] : memref<1x1x256xi32, #tpu.memory_space<vmem>>, vector<1x1x256xi32>
    %6 = vector.shape_cast %5 : vector<1x1x256xi32> to vector<1x256xi32>
    %c0_6 = arith.constant 0 : index
    %c0_7 = arith.constant 0 : index
    %c0_8 = arith.constant 0 : index
    %7 = vector.load %arg5[%c0_6, %c0_7, %c0_8] : memref<1x1x256xf32, #tpu.memory_space<vmem>>, vector<1x1x256xf32>
    %8 = vector.shape_cast %7 : vector<1x1x256xf32> to vector<1x256xf32>
    %cst = arith.constant dense<0xFF800000> : vector<256xf32>
    %9 = vector.multi_reduction <maximumf>, %4, %cst [0] : vector<4x256xf32> to vector<256xf32>
    %10 = vector.shape_cast %9 : vector<256xf32> to vector<1x256xf32>
    %11 = vector.broadcast %10 : vector<1x256xf32> to vector<4x256xf32>
    %12 = arith.subf %4, %11 : vector<4x256xf32>
    %13 = math.exp %12 : vector<4x256xf32>
    %cst_9 = arith.constant dense<0.000000e+00> : vector<256xf32>
    %14 = vector.multi_reduction <add>, %13, %cst_9 [0] : vector<4x256xf32> to vector<256xf32>
    %15 = vector.shape_cast %14 : vector<256xf32> to vector<1x256xf32>
    %16 = math.log %15 : vector<1x256xf32>
    %17 = arith.addf %16, %10 : vector<1x256xf32>
    %18 = tpu.iota {dimensions = array<i32: 0>} : vector<4x256xi32>
    %19 = vector.broadcast %6 : vector<1x256xi32> to vector<4x256xi32>
    %20 = arith.cmpi eq, %18, %19 : vector<4x256xi32>
    %cst_10 = arith.constant 0.000000e+00 : f32
    %21 = vector.broadcast %cst_10 : f32 to vector<4x256xf32>
    %22 = arith.select %20, %4, %21 : vector<4x256xi1>, vector<4x256xf32>
    %cst_11 = arith.constant dense<0.000000e+00> : vector<256xf32>
    %23 = vector.multi_reduction <add>, %22, %cst_11 [0] : vector<4x256xf32> to vector<256xf32>
    %24 = vector.shape_cast %23 : vector<256xf32> to vector<1x256xf32>
    %c1_i32 = arith.constant 1 : i32
    %25 = arith.muli %arg1, %c1_i32 : i32
    %26 = arith.addi %25, %arg2 : i32
    %27 = tpu.iota {dimensions = array<i32: 1>} : vector<1x256xi32>
    %c256_i32 = arith.constant 256 : i32
    %28 = arith.muli %26, %c256_i32 : i32
    %29 = vector.broadcast %28 : i32 to vector<1x256xi32>
    %30 = arith.addi %27, %29 : vector<1x256xi32>
    %c255_i32 = arith.constant 255 : i32
    %31 = vector.broadcast %c255_i32 : i32 to vector<1x256xi32>
    %32 = arith.cmpi ne, %6, %31 : vector<1x256xi32>
    %c256_i32_12 = arith.constant 256 : i32
    %33 = vector.broadcast %c256_i32_12 : i32 to vector<1x256xi32>
    %34 = arith.cmpi slt, %30, %33 : vector<1x256xi32>
    %35 = arith.andi %32, %34 : vector<1x256xi1>
    %36 = arith.subf %17, %24 : vector<1x256xf32>
    %37 = arith.mulf %36, %8 : vector<1x256xf32>
    %cst_13 = arith.constant 0.000000e+00 : f32
    %38 = vector.broadcast %cst_13 : f32 to vector<1x256xf32>
    %39 = arith.select %35, %37, %38 : vector<1x256xi1>, vector<1x256xf32>
    %c0_14 = arith.constant 0 : index
    %c0_15 = arith.constant 0 : index
    %40 = vector.load %arg7[%c0_14, %c0_15] : memref<1x256xf32, #tpu.memory_space<vmem>>, vector<1x256xf32>
    %41 = arith.addf %40, %39 : vector<1x256xf32>
    %c0_16 = arith.constant 0 : index
    %c0_17 = arith.constant 0 : index
    %42 = vector.load %arg7[%c0_16, %c0_17] : memref<1x256xf32, #tpu.memory_space<vmem>>, vector<1x256xf32>
    tpu.vector_store %arg7[%c0_16, %c0_17], %41 {strides = array<i32>} : memref<1x256xf32, #tpu.memory_space<vmem>>, vector<1x256xf32>,
    %c0_i32_18 = arith.constant 0 : i32
    %43 = arith.cmpi eq, %arg2, %c0_i32_18 : i32
    %44 = arith.extui %43 : i1 to i32
    %c0_i32_19 = arith.constant 0 : i32
    %45 = arith.cmpi ne, %44, %c0_i32_19 : i32
    scf.if %45 {
      %c0_20 = arith.constant 0 : index
      %c0_21 = arith.constant 0 : index
      %46 = vector.load %arg7[%c0_20, %c0_21] : memref<1x256xf32, #tpu.memory_space<vmem>>, vector<1x256xf32>
      %47 = vector.shape_cast %46 : vector<1x256xf32> to vector<1x1x256xf32>
      %cst_22 = arith.constant dense<0.000000e+00> : vector<1xf32>
      %48 = vector.multi_reduction <add>, %47, %cst_22 [1, 2] : vector<1x1x256xf32> to vector<1xf32>
      %49 = vector.shape_cast %48 : vector<1xf32> to vector<1x1x1xf32>
      %50 = vector.extract %49[0, 0, 0] : f32 from vector<1x1x1xf32>
      %51 = vector.broadcast %50 : f32 to vector<1x1x1x1xf32>
      %c0_23 = arith.constant 0 : index
      %c0_24 = arith.constant 0 : index
      %c0_25 = arith.constant 0 : index
      %c0_26 = arith.constant 0 : index
      %52 = vector.load %arg6[%c0_23, %c0_24, %c0_25, %c0_26] : memref<1x1x1x1xf32, #tpu.memory_space<vmem>>, vector<1x1x1x1xf32>
      tpu.vector_store %arg6[%c0_23, %c0_24, %c0_25, %c0_26], %51 {strides = array<i32>} : memref<1x1x1x1xf32, #tpu.memory_space<vmem>>, vector<1x1x1x1xf32>,
    } else {
    }
    return
  }
  func.func @transform_0(%arg0: i32, %arg1: i32, %arg2: i32) -> (i32, i32, i32) {
    %c1_i32 = arith.constant 1 : i32
    %0 = arith.muli %arg1, %c1_i32 : i32
    %1 = arith.addi %0, %arg2 : i32
    %c0_i32 = arith.constant 0 : i32
    %2 = arith.minsi %1, %c0_i32 : i32
    %c0_i32_0 = arith.constant 0 : i32
    %c0_i32_1 = arith.constant 0 : i32
    return %arg0, %c0_i32_0, %2 : i32, i32, i32
  }
  func.func @transform_1(%arg0: i32, %arg1: i32, %arg2: i32) -> (i32, i32, i32) {
    %c1_i32 = arith.constant 1 : i32
    %0 = arith.muli %arg1, %c1_i32 : i32
    %1 = arith.addi %0, %arg2 : i32
    %c0_i32 = arith.constant 0 : i32
    %2 = arith.minsi %1, %c0_i32 : i32
    %c0_i32_0 = arith.constant 0 : i32
    %c0_i32_1 = arith.constant 0 : i32
    return %arg0, %c0_i32_0, %2 : i32, i32, i32
  }
  func.func @transform_2(%arg0: i32, %arg1: i32, %arg2: i32) -> (i32, i32, i32) {
    %c1_i32 = arith.constant 1 : i32
    %0 = arith.muli %arg1, %c1_i32 : i32
    %1 = arith.addi %0, %arg2 : i32
    %c0_i32 = arith.constant 0 : i32
    %2 = arith.minsi %1, %c0_i32 : i32
    %c0_i32_0 = arith.constant 0 : i32
    %c0_i32_1 = arith.constant 0 : i32
    return %arg0, %c0_i32_0, %2 : i32, i32, i32
  }
  func.func @transform_3(%arg0: i32, %arg1: i32, %arg2: i32) -> (i32, i32, i32, i32) {
    %c0_i32 = arith.constant 0 : i32
    %c0_i32_0 = arith.constant 0 : i32
    %c0_i32_1 = arith.constant 0 : i32
    return %arg0, %arg1, %c0_i32, %c0_i32_0 : i32, i32, i32, i32
  }
}

</mosaic_0001>

<bundles_post_ra>
// kernel: cross_entropy_2d_pixel_wise_weighted.1
= control target key start
LH: loop header
LB: loop body
LE: loop exit
PB: predicated region body
PF: predicated region fallthrough
CT: control target
= control target key end

     0   :  { %s693_s12 = smov 0   ;;  %s695_s13 = smov 0   ;;  %s773_s0 = inlined_call_operand.vmem [shape: f32[2,4,256], index: 0, kind: input, shape index: {}]   ;;  %s774_s1 = inlined_call_operand.vmem [shape: s32[2,1,256], index: 1, kind: input, shape index: {}]   ;;  %s775_s2 = inlined_call_operand.vmem [shape: f32[2,1,256], index: 2, kind: input, shape index: {}]   ;;  %s776_s3 = inlined_call_operand.vmem [shape: f32[2,1,1,1], index: 3, kind: output, shape index: {}]  }
   0x1   :  { %s697_s14 = smov 0  }
   0x2 LB: > { %s32_s15 = sadd.s32 1, %s665_s13  ;;  %p605_p0 = scmp.ge.s32.totalorder %s669_s14, 1  ;;  %s669_s14 = sphi %s697_s14, %s13_s14   ;;  %s665_s13 = sphi %s695_s13, %s780_s13   ;;  %s661_s12 = sphi %s693_s12, %s779_s12  }
   0x3   : > { %p34_p1 = scmp.ge.s32.totalorder %s32_s15, 2  ;;  %p233_p2 = scmp.lt.s32.totalorder %s669_s14, 3 }
   0x5   : > { %s782_s15 = smov (%p34_p1, %s32_s15), 0  ;;  %p234_p3 = pnand %p605_p0, %p233_p2 }
   0x6   : > { %p291_p4 = scmp.lt.s32.totalorder (!%p234_p3), %s661_s12, 1 }
   0x7   : > { %237 = sbr.rel (%p234_p3) target bundleno = 287 (0x11f), region = 32 }
   0xc   : > { %v343_v0 = vlaneseq  ;;  %s784_s12 = smov (!%p291_p4, %s661_s12), 1  ;;  %v671_v2 = vmov 0.0   ;;  %vm357_vm1 = vcmask 1043456   ;;  %v672_v62 = vmov 1  }
   0xd   : > { %s612_s16 = sshll.u32 %s784_s12, 3  ;;  %s608_s20 = sshll.u32 %s784_s12, 1  ;;  %v446_v63 = vrot.slane %v672_v62, 7  ;;  %vm447_vm4 = vcmask 1040384   ;;  %vm495_vm8 = vcmask 0  }
   0xe   : > { %vm713_vm0 = vcmp.lt.s32.totalorder %v343_v0, 256  ;;  %s298_s19 = scalar_lea.vmem %s773_s0, %s612_s16  ;;  %s313_s23 = scalar_lea.vmem %s774_s1, %s608_s20  ;;  %v407_v30 = vshrl.u32 %v343_v0, 7 }
   0xf   : > { %347 = vst.msk [vmem:[#allocation2] sm:$0x3] %vm713_vm0, %v671_v2  ;;  %v348_v3 = vld [vmem:[%s298_s19] sm:$0xff]  ;;  %s328_s26 = scalar_lea.vmem %s775_s2, %s608_s20  ;;  %s338_s29 = scalar_lea.vmem %s776_s3, %s784_s12 }
  0x10   : > { %352 = vst [vmem:[#allocation1] ss:$2 sm:$0xff] %v348_v3  ;;  %v738_v25 = vld [vmem:[%s313_s23] sm:$0x3] }
  0x11   : > { %v408_v33 = vperm.slane %v738_v25, 0  ;;  %v409_v34 = vperm.slane %v738_v25, 1  ;;  %v350_v2 = vld [vmem:[%s328_s26] sm:$0x3]  ;;  %vm441_vm5 = vcmp.ne.s32.totalorder %v738_v25, 255 }
  0x13   : > { %vm410_vm2 = vcmp.eq.s32.totalorder %v407_v30, %v408_v33  ;;  %vm411_vm3 = vcmp.eq.s32.totalorder %v407_v30, %v409_v34 }
  0x17   : > { %v353_v4 = vld.sshfl [vmem:[#allocation1] sm:$0xff pattern:$0x75316420]  ;;  %v354_v5 = vld.sshfl [vmem:[#allocation1 + $0x8] sm:$0xff pattern:$0x75316420] }
  0x18   : > { %v358_v6 = vsel %vm357_vm1, %v353_v4, -inf  ;;  %v365_v7 = vsel %vm357_vm1, %v354_v5, -inf }
  0x19   : > { %v359_v8 = vrot.slane %v358_v6, 4  ;;  %v366_v9 = vrot.slane %v365_v7, 4 }
  0x1b   : > { %v360_v10 = vmax.f32 %v358_v6, %v359_v8  ;;  %v367_v11 = vmax.f32 %v365_v7, %v366_v9  ;;  %v448_v9 = vsel %vm447_vm4, 1, %v446_v63 }
  0x1c   : > { %vm449_vm6 = vcmp.ne.s32.totalorder %v448_v9, 0 }
  0x1d   : > { %v361_v12 = vrot.slane %v360_v10, 2  ;;  %v368_v13 = vrot.slane %v367_v11, 2  ;;  %vm450_vm7 = vmand %vm441_vm5, %vm449_vm6 }
  0x1f   : > { %v362_v14 = vmax.f32 %v360_v10, %v361_v12  ;;  %v369_v15 = vmax.f32 %v367_v11, %v368_v13  ;;  %v454_v10 = vperm.slane %v350_v2, 0  ;;  %v455_v11 = vperm.slane %v350_v2, 1 }
  0x21   : > { %v363_v16 = vrot.slane %v362_v14, 1  ;;  %v370_v17 = vrot.slane %v369_v15, 1 }
  0x23   : > { %v725_v18 = vmax.f32 %v362_v14, %v363_v16  ;;  %v727_v19 = vmax.f32 %v369_v15, %v370_v17  ;;  %v466_v17 = vld [vmem:[#allocation2] sm:$0x3] }
  0x25   : > { %v374_v20 = vrot.slane %v727_v19, 4 }
  0x27   : > { %v375_v21 = vsel %vm357_vm1, %v725_v18, %v374_v20 }
  0x28   : > { %v377_v22 = vsub.f32 %v348_v3, %v375_v21 }
  0x2a   : > { %v378_v23 = vmul.f32 1.442695, %v377_v22 }
  0x2c   : > { %641 = vpow2.f32 %v378_v23 }
  0x32   : > { %v642_v24 = vpop.eup %641 }
  0x33   : > { %381 = vst [vmem:[#allocation1] ss:$2 sm:$0xff] %v642_v24 }
  0x3a   : > { %v382_v26 = vld.sshfl [vmem:[#allocation1] sm:$0xff pattern:$0x75316420]  ;;  %v383_v27 = vld.sshfl [vmem:[#allocation1 + $0x8] sm:$0xff pattern:$0x75316420] }
  0x3b   : > { %v386_v28 = vsel %vm357_vm1, %v382_v26, 0.0  ;;  %v393_v29 = vsel %vm357_vm1, %v383_v27, 0.0  ;;  %412 = vst [vmem:[#allocation1] ss:$2 sm:$0xff] %v348_v3 }
  0x3c   : > { %v387_v31 = vrot.slane %v386_v28, 4  ;;  %v394_v32 = vrot.slane %v393_v29, 4 }
  0x3e   : > { %v388_v35 = vadd.f32 %v387_v31, %v386_v28  ;;  %v395_v36 = vadd.f32 %v394_v32, %v393_v29 }
  0x40   : > { %v389_v37 = vrot.slane %v388_v35, 2  ;;  %v396_v38 = vrot.slane %v395_v36, 2 }
  0x42   : > { %v390_v39 = vadd.f32 %v389_v37, %v388_v35  ;;  %v397_v40 = vadd.f32 %v396_v38, %v395_v36  ;;  %v413_v41 = vld.sshfl [vmem:[#allocation1] sm:$0xff pattern:$0x75316420]  ;;  %v414_v42 = vld.sshfl [vmem:[#allocation1 + $0x8] sm:$0xff pattern:$0x75316420] }
  0x43   : > { %v417_v43 = vsel %vm410_vm2, %v413_v41, 0.0  ;;  %v418_v44 = vsel %vm411_vm3, %v414_v42, 0.0 }
  0x44   : > { %v391_v45 = vrot.slane %v390_v39, 1  ;;  %v398_v46 = vrot.slane %v397_v40, 1  ;;  %v419_v47 = vsel %vm357_vm1, %v417_v43, 0.0  ;;  %v426_v48 = vsel %vm357_vm1, %v418_v44, 0.0 }
  0x45   : > { %v420_v49 = vrot.slane %v419_v47, 4  ;;  %v427_v50 = vrot.slane %v426_v48, 4 }
  0x46   : > { %v392_v51 = vadd.f32 %v391_v45, %v390_v39  ;;  %v399_v52 = vadd.f32 %v398_v46, %v397_v40 }
  0x47   : > { %v421_v53 = vadd.f32 %v420_v49, %v419_v47  ;;  %v428_v54 = vadd.f32 %v427_v50, %v426_v48 }
  0x48   : > { %643 = vlog2.f32 %v392_v51 }
  0x49   : > { %645 = vlog2.f32 %v399_v52  ;;  %v422_v55 = vrot.slane %v421_v53, 2  ;;  %v429_v56 = vrot.slane %v428_v54, 2 }
  0x4b   : > { %v423_v57 = vadd.f32 %v422_v55, %v421_v53  ;;  %v430_v58 = vadd.f32 %v429_v56, %v428_v54 }
  0x4d   : > { %v424_v59 = vrot.slane %v423_v57, 1  ;;  %v431_v60 = vrot.slane %v430_v58, 1 }
  0x4e   : > { %v644_v61 = vpop.eup %643 }
  0x4f   : > { %v646_v0 = vpop.eup %645  ;;  %v401_v3 = vmul.f32 0.6931472, %v644_v61  ;;  %v425_v4 = vadd.f32 %v424_v59, %v423_v57  ;;  %v432_v6 = vadd.f32 %v431_v60, %v430_v58 }
  0x50   : > { %v403_v5 = vmul.f32 0.6931472, %v646_v0 }
  0x51   : > { %v404_v7 = vadd.f32 %v401_v3, %v725_v18 }
  0x52   : > { %v405_v8 = vadd.f32 %v403_v5, %v727_v19 }
  0x53   : > { %v451_v12 = vsub.f32 %v404_v7, %v425_v4 }
  0x54   : > { %v452_v13 = vsub.f32 %v405_v8, %v432_v6 }
  0x55   : > { %v458_v14 = vmul.f32 %v454_v10, %v451_v12 }
  0x56   : > { %v459_v15 = vmul.f32 %v455_v11, %v452_v13 }
  0x58   : > { %v462_v16 = vrot.slane %v459_v15, 7 }
  0x5a   : > { %v463_v20 = vsel %vm447_vm4, %v458_v14, %v462_v16 }
  0x5b   : > { %v465_v21 = vsel %vm450_vm7, %v463_v20, 0.0 }
  0x5c   : > { %v467_v18 = vadd.f32 %v466_v17, %v465_v21 }
  0x5e   : > { %472 = vst.msk [vmem:[#allocation2] sm:$0x3] %vm713_vm0, %v467_v18 }
  0x65   : > { %v476_v19 = vld [vmem:[#allocation2] sm:$0x3] }
  0x66   : > { %v478_v22 = vperm.slane %v476_v19, 0  ;;  %v479_v23 = vperm.slane %v476_v19, 1 }
  0x68   : > { %v482_v24 = vsel %vm447_vm4, %v478_v22, 0.0  ;;  %v483_v25 = vsel %vm447_vm4, %v479_v23, 0.0 }
  0x69   : > { %v484_v26 = vadd.f32 %v483_v25, %v482_v24 }
  0x6b   : > { %485 = vadd.xlane.f32.xlu0 %v484_v26 }
  0xde   : > { %v486_v27 = vpop.xlane.xlu0 %485 }
  0xdf   : > { %v487_v28 = vrot.slane %v486_v27, 4 }
  0xe1   : > { %v488_v29 = vadd.f32 %v487_v28, %v486_v27 }
  0xe3   : > { %v489_v30 = vrot.slane %v488_v29, 2 }
  0xe5   : > { %v490_v31 = vadd.f32 %v489_v30, %v488_v29 }
  0xe7   : > { %v491_v32 = vrot.slane %v490_v31, 1 }
  0xe9   : > { %v492_v33 = vadd.f32 %v491_v32, %v490_v31 }
  0xeb   : > { %613 = vpush %v492_v33 }
 0x11c   : > { %s614_s30 = spop %613 }
 0x11d   : > { %v494_v1 = vstv %s614_s30 }
 0x11e   : > { %496 = vst.msk [vmem:[%s338_s29] sm:$0x1] %vm495_vm8, %v494_v1 }
 0x11f PF: > { %s13_s14 = sadd.s32 1, %s669_s14   ;;  %s779_s12 = smov %s665_s13 }
 0x120   : > { %p10_p5 = scmp.ge.s32.totalorder %s13_s14, 4   ;;  %s780_s13 = smov %s782_s15 }
 0x122   :  { %12 = sbr.rel (!%p10_p5) target bundleno = 2 (0x2), region = 76 }

</bundles_post_ra>
